<compile_context>
chip_gen: v5e
topology: v5e:2x2
jax: 0.10.0
libtpu: 0.0.40
codegen_flags: <defaults>
</compile_context>

<pallas_src>
import functools
import math

import jax
import jax.numpy as jnp
import numpy as np
from jax.experimental import pallas as pl
from jax.experimental.pallas import tpu as pltpu

# Finite "minus infinity" for the additive edge mask.  Keep it FINITE:
# a true -inf would make fully-masked softmax rows compute exp(-inf - -inf)
# = NaN before the has_edge zeroing.
NEG_INF = -1e30
LANE = 128


def _round_up(n, m):
    return ((n + m - 1) // m) * m


# ------------------------- stage A: node projection -------------------------

def _node_proj_kernel(x_ref, w_ref, b_ref, o_ref):
    # bf16 MXU operands, f32 accumulation / output.
    x = x_ref[...].astype(jnp.bfloat16)
    o_ref[...] = jnp.dot(x, w_ref[...],
                         preferred_element_type=jnp.float32) + b_ref[...]


def node_projection(x_pad, w_cat_bf16, b_cat, *, tile_rows):
    n_pad, in_dim = x_pad.shape
    p_cols = w_cat_bf16.shape[1]
    return pl.pallas_call(
        _node_proj_kernel,
        out_shape=jax.ShapeDtypeStruct((n_pad, p_cols), jnp.float32),
        grid_spec=pltpu.PrefetchScalarGridSpec(
            num_scalar_prefetch=0,
            grid=(n_pad // tile_rows,),
            in_specs=[
                pl.BlockSpec((tile_rows, in_dim), lambda i: (i, 0)),
                pl.BlockSpec((in_dim, p_cols), lambda i: (0, 0)),
                pl.BlockSpec((1, p_cols), lambda i: (0, 0)),
            ],
            out_specs=pl.BlockSpec((tile_rows, p_cols), lambda i: (i, 0)),
        ),
        compiler_params=pltpu.CompilerParams(
            dimension_semantics=("parallel",)),
    )(x_pad, w_cat_bf16, b_cat)


# ------------------ stage B: per-edge-type GATConv kernel -------------------

def _gat_edge_kernel(adj_ref, a_dst_ref, has_edge_ref, a_srcT_ref, xs_ref,
                     o_ref, m_sc, l_sc, *, num_heads, channels):
    """grid = (dst_tiles, src_tiles); src axis streams + accumulates."""
    H, C = num_heads, channels
    s_idx = pl.program_id(1)
    n_s = pl.num_programs(1)

    @pl.when(s_idx == 0)
    def _init():
        m_sc[...] = jnp.full_like(m_sc, NEG_INF)
        l_sc[...] = jnp.zeros_like(l_sc)
        o_ref[...] = jnp.zeros_like(o_ref)

    # Additive edge mask, shared by all heads: int8 0/1 -> f32 {0, -1e30}.
    adj_f = adj_ref[...].astype(jnp.float32)
    mask_bias = (1.0 - adj_f) * NEG_INF                 # [TD, TS]

    a_dst = a_dst_ref[...]                              # [TD, H]   f32
    a_srcT = a_srcT_ref[...]                            # [H, TS]   f32
    xs = xs_ref[...]                                    # [TS, H*C] bf16

    for h in range(H):                                  # static unroll (H=4)
        e = a_dst[:, h:h + 1] + a_srcT[h:h + 1, :]      # [TD, TS]
        e = jnp.maximum(e, 0.2 * e)                     # LeakyReLU(0.2)
        e = e + mask_bias
        m_prev = m_sc[:, h:h + 1]
        m_new = jnp.maximum(m_prev, jnp.max(e, axis=-1, keepdims=True))
        scale = jnp.exp(m_prev - m_new)                 # rescale old stats
        p = jnp.exp(e - m_new)                          # masked lanes -> 0
        l_sc[:, h:h + 1] = scale * l_sc[:, h:h + 1] + jnp.sum(
            p, axis=-1, keepdims=True)
        contrib = jnp.dot(p.astype(jnp.bfloat16), xs[:, h * C:(h + 1) * C],
                          preferred_element_type=jnp.float32)
        o_ref[:, h * C:(h + 1) * C] = (
            scale * o_ref[:, h * C:(h + 1) * C] + contrib)
        m_sc[:, h:h + 1] = m_new

    @pl.when(s_idx == n_s - 1)
    def _finalize():
        has_edge = has_edge_ref[...]                    # [TD, 1] 0/1
        inv_l = pl.reciprocal(l_sc[...], approx=True)   # EUP, ~free slot
        for h in range(H):
            o_ref[:, h * C:(h + 1) * C] = (
                o_ref[:, h * C:(h + 1) * C] * (inv_l[:, h:h + 1] * has_edge))


def gat_edge_conv(adj_i8, a_dst, has_edge, a_srcT, xs_bf16, *, num_heads,
                  channels, tile_d, tile_s):
    nd_pad, ns_pad = adj_i8.shape
    H, C = num_heads, channels
    HC = H * C
    kernel = functools.partial(_gat_edge_kernel, num_heads=H, channels=C)
    n_d_tiles = nd_pad // tile_d
    cost = pl.CostEstimate(
        flops=int(2 * nd_pad * ns_pad * H * (C + 4)),
        transcendentals=int(nd_pad * ns_pad * H),
        bytes_accessed=int(nd_pad * ns_pad                      # int8 adjacency
                           + n_d_tiles * ns_pad * HC * 2        # xs re-reads
                           + nd_pad * HC * 4))                  # output
    return pl.pallas_call(
        kernel,
        out_shape=jax.ShapeDtypeStruct((nd_pad, HC), jnp.float32),
        grid_spec=pltpu.PrefetchScalarGridSpec(
            num_scalar_prefetch=0,
            grid=(nd_pad // tile_d, ns_pad // tile_s),
            in_specs=[
                pl.BlockSpec((tile_d, tile_s), lambda d, s: (d, s)),  # adj
                pl.BlockSpec((tile_d, H), lambda d, s: (d, 0)),       # a_dst
                pl.BlockSpec((tile_d, 1), lambda d, s: (d, 0)),       # has_edge
                pl.BlockSpec((H, tile_s), lambda d, s: (0, s)),       # a_src^T
                pl.BlockSpec((tile_s, HC), lambda d, s: (s, 0)),      # xs bf16
            ],
            out_specs=pl.BlockSpec((tile_d, HC), lambda d, s: (d, 0)),
            scratch_shapes=[pltpu.VMEM((tile_d, H), jnp.float32),     # m
                            pltpu.VMEM((tile_d, H), jnp.float32)],    # l
        ),
        compiler_params=pltpu.CompilerParams(
            # dst tiles shard across v7x's 2 TensorCores; src axis is the
            # streamed / accumulated reduction axis.
            dimension_semantics=("parallel", "arbitrary"),
            vmem_limit_bytes=48 * 1024 * 1024),   # v7x-safe budget (64 MiB phys)
        cost_estimate=cost,
    )(adj_i8, a_dst, has_edge, a_srcT, xs_bf16)


# ------------- stage C: HeteroConv sum + ELU (+ out_layer on user) ----------

def _combine_kernel(*refs, num_partials, apply_out_layer):
    p_refs = refs[:num_partials]
    rest = refs[num_partials:]
    if apply_out_layer:
        bias_ref, w_ref, b_ref, o_ref = rest
    else:
        bias_ref, o_ref = rest
        w_ref = b_ref = None
    v = p_refs[0][...]
    for r in p_refs[1:]:
        v = v + r[...]
    v = v + bias_ref[...]                                     # summed GAT biases
    v = jnp.where(v > 0, v, jnp.exp(jnp.minimum(v, 0.0)) - 1.0)   # ELU
    if apply_out_layer:
        v = jnp.dot(v.astype(jnp.bfloat16), w_ref[...],
                    preferred_element_type=jnp.float32) + b_ref[...]
    o_ref[...] = v


def combine_dst(partials, bias_total, out_w_pad=None, out_b_pad=None, *,
                tile_rows):
    nd_pad, HC = partials[0].shape
    apply_out = out_w_pad is not None
    out_cols = out_w_pad.shape[1] if apply_out else HC
    in_specs = [pl.BlockSpec((tile_rows, HC), lambda i: (i, 0))
                for _ in partials]
    in_specs.append(pl.BlockSpec((1, HC), lambda i: (0, 0)))
    ops = list(partials) + [bias_total]
    if apply_out:
        in_specs.append(pl.BlockSpec(out_w_pad.shape, lambda i: (0, 0)))
        in_specs.append(pl.BlockSpec((1, out_cols), lambda i: (0, 0)))
        ops += [out_w_pad, out_b_pad]
    kernel = functools.partial(_combine_kernel, num_partials=len(partials),
                               apply_out_layer=apply_out)
    return pl.pallas_call(
        kernel,
        out_shape=jax.ShapeDtypeStruct((nd_pad, out_cols), jnp.float32),
        grid_spec=pltpu.PrefetchScalarGridSpec(
            num_scalar_prefetch=0,
            grid=(nd_pad // tile_rows,),
            in_specs=in_specs,
            out_specs=pl.BlockSpec((tile_rows, out_cols), lambda i: (i, 0)),
        ),
        compiler_params=pltpu.CompilerParams(
            dimension_semantics=("parallel",)),
    )(*ops)


# ----------------------- host-side one-time weight folding ------------------

def _fold_edge_params(proj_w, proj_b, conv_p, num_heads, channels):
    """Fold proj Linear + GATConv lin + att_src/att_dst (all exact/linear)."""
    H, C = num_heads, channels
    in_dim = proj_w.shape[0]
    HC = H * C
    w_lin = proj_w @ conv_p["lin_w"]                           # [in_dim, H*C]
    b_lin = (proj_b @ conv_p["lin_w"]).reshape(1, HC)          # [1, H*C]
    att_src = conv_p["att_src"].reshape(H, C)
    att_dst = conv_p["att_dst"].reshape(H, C)
    w_lin_r = w_lin.reshape(in_dim, H, C)
    b_lin_r = b_lin.reshape(H, C)
    w_asrc = jnp.einsum("ihc,hc->ih", w_lin_r, att_src)        # [in_dim, H]
    b_asrc = jnp.sum(b_lin_r * att_src, axis=-1).reshape(1, H)
    w_adst = jnp.einsum("ihc,hc->ih", w_lin_r, att_dst)        # [in_dim, H]
    b_adst = jnp.sum(b_lin_r * att_dst, axis=-1).reshape(1, H)
    return dict(w_lin=w_lin, b_lin=b_lin, w_asrc=w_asrc, b_asrc=b_asrc,
                w_adst=w_adst, b_adst=b_adst,
                conv_bias=conv_p["bias"].reshape(1, HC))


def build_node_proj_weights(folded, node_types, edge_types, num_heads,
                            channels):
    """Per node type, concatenate every folded weight that consumes it so the
    raw features hit the MXU once (stage A)."""
    H, C = num_heads, channels
    HC = H * C
    weights, layouts = {}, {}
    for nt in node_types:
        cols, bias_cols = [], []
        layout = {"feat": {}, "a_src": {}, "a_dst": {}}
        off = 0
        for et in edge_types:               # projected src features per edge type
            if et[0] == nt:
                f = folded[et]
                cols.append(f["w_lin"]); bias_cols.append(f["b_lin"])
                layout["feat"][et] = (off, off + HC); off += HC
        for et in edge_types:               # alpha_src per edge type
            if et[0] == nt:
                f = folded[et]
                cols.append(f["w_asrc"]); bias_cols.append(f["b_asrc"])
                layout["a_src"][et] = (off, off + H); off += H
        for et in edge_types:               # alpha_dst per edge type
            if et[2] == nt:
                f = folded[et]
                cols.append(f["w_adst"]); bias_cols.append(f["b_adst"])
                layout["a_dst"][et] = (off, off + H); off += H
        if off == 0:
            continue                        # node type not used by any edge type
        w_cat = jnp.concatenate(cols, axis=1)
        b_cat = jnp.concatenate(bias_cols, axis=1)
        p_pad = _round_up(w_cat.shape[1], LANE)     # lane-dense stage-A output
        if p_pad > w_cat.shape[1]:
            w_cat = jnp.pad(w_cat, ((0, 0), (0, p_pad - w_cat.shape[1])))
            b_cat = jnp.pad(b_cat, ((0, 0), (0, p_pad - b_cat.shape[1])))
        weights[nt] = (w_cat.astype(jnp.bfloat16), b_cat.astype(jnp.float32))
        layouts[nt] = layout
    return weights, layouts


# -------------------------------- forward -----------------------------------

def hetero_gat_forward(params, x_dict, edge_dict, *, hidden_dim, out_dim,
                       num_heads, out_node_type="user", tile_d=128,
                       tile_s=128):
    """SimpleHeteroGATPyG forward: proj -> HeteroConv(GATConv, 'sum') -> ELU
    -> out_layer on 'user'.  Edge lists become dense int8 masks adj[dst, src]
    (exact for simple graphs)."""
    H, C = num_heads, hidden_dim
    HC = H * C
    node_types = list(x_dict.keys())
    edge_types = list(edge_dict.keys())

    folded = {et: _fold_edge_params(params["proj_w"], params["proj_b"],
                                    params["conv"][et], H, C)
              for et in edge_types}

    # Pad node counts so dst-row and src-col tilings both divide evenly.
    pad_mult = tile_d * tile_s // math.gcd(tile_d, tile_s)
    n_orig = {nt: x_dict[nt].shape[0] for nt in node_types}
    n_pad = {nt: _round_up(n_orig[nt], pad_mult) for nt in node_types}
    x_pad = {nt: jnp.pad(x_dict[nt], ((0, n_pad[nt] - n_orig[nt]), (0, 0)))
             for nt in node_types}

    # ----- stage A: one fused bf16 projection matmul per node type ---------
    proj_w_cat, layouts = build_node_proj_weights(folded, node_types,
                                                  edge_types, H, C)
    proj_out = {}
    for nt in node_types:
        if nt not in proj_w_cat:
            continue
        w_cat, b_cat = proj_w_cat[nt]
        proj_out[nt] = node_projection(x_pad[nt], w_cat, b_cat,
                                       tile_rows=tile_d)

    # ----- stage B: gridded GATConv (attention + aggregation) per edge type -
    partials, biases = {}, {}
    for et in edge_types:
        st, _, dt = et
        ns, nd = n_pad[st], n_pad[dt]
        adj = np.zeros((nd, ns), dtype=np.int8)      # adj[dst, src] in {0,1}
        for s, d in edge_dict[et]:
            adj[d, s] = 1
        adj_i8 = jnp.asarray(adj)
        has_edge = jnp.asarray(adj.any(axis=1, keepdims=True)
                               .astype(np.float32))  # host-precomputed degree>0

        lsrc, ldst = layouts[st], layouts[dt]
        f0, f1 = lsrc["feat"][et]
        xs = proj_out[st][:, f0:f1].astype(jnp.bfloat16)   # [ns, H*C]
        s0, s1 = lsrc["a_src"][et]
        a_srcT = proj_out[st][:, s0:s1].T                  # [H, ns]
        d0, d1 = ldst["a_dst"][et]
        a_dst = proj_out[dt][:, d0:d1]                     # [nd, H]

        out_et = gat_edge_conv(adj_i8, a_dst, has_edge, a_srcT, xs,
                               num_heads=H, channels=C,
                               tile_d=tile_d, tile_s=tile_s)
        partials.setdefault(dt, []).append(out_et)
        biases[dt] = biases.get(dt, jnp.zeros((1, HC), jnp.float32)) \
            + folded[et]["conv_bias"]

    # ----- stage C: HeteroConv 'sum' + ELU (+ lane-padded out_layer) --------
    out_pad_cols = _round_up(out_dim, LANE)
    out_w_pad = jnp.pad(params["out_w"],
                        ((0, 0), (0, out_pad_cols - out_dim))
                        ).astype(jnp.bfloat16)
    out_b_pad = jnp.pad(params["out_b"], ((0, 0), (0, out_pad_cols - out_dim)))

    results = {}
    for dt, plist in partials.items():
        if dt == out_node_type:
            y = combine_dst(plist, biases[dt], out_w_pad, out_b_pad,
                            tile_rows=tile_d)
            results[dt] = y[:n_orig[dt], :out_dim]
        else:
            y = combine_dst(plist, biases[dt], tile_rows=tile_d)
            results[dt] = y[:n_orig[dt], :]
    return results


# --------------------------- parameter init (glue) --------------------------

def _xavier_uniform(key, shape, fan_in, fan_out):
    bound = math.sqrt(6.0 / (fan_in + fan_out))
    return jax.random.uniform(key, shape, jnp.float32, -bound, bound)


def init_params(key, in_dim, hidden_dim, out_dim, num_heads, edge_types):
    H, C = num_heads, hidden_dim
    keys = jax.random.split(key, 2 + len(edge_types))
    params = {
        "proj_w": _xavier_uniform(keys[0], (in_dim, hidden_dim), in_dim, hidden_dim),
        "proj_b": jnp.zeros((1, hidden_dim), jnp.float32),
        "out_w": _xavier_uniform(keys[1], (H * C, out_dim), H * C, out_dim),
        "out_b": jnp.zeros((1, out_dim), jnp.float32),
        "conv": {},
    }
    for i, et in enumerate(edge_types):
        k0, k1, k2 = jax.random.split(keys[2 + i], 3)
        params["conv"][et] = {
            "lin_w": _xavier_uniform(k0, (C, H * C), C, H * C),
            "att_src": _xavier_uniform(k1, (H, 1, C), C, C),
            "att_dst": _xavier_uniform(k2, (H, 1, C), C, C),
            "bias": jnp.zeros((H * C,), jnp.float32),
        }
    return params


# ----------------------------------- main -----------------------------------

if __name__ == "__main__":
    in_dim, hidden_dim, out_dim, num_heads = 16, 32, 8, 4
    n_user, n_item = 200, 160      # pads to 256 each -> 2x2 grid per edge type

    key = jax.random.PRNGKey(0)
    k_params, k_user, k_item = jax.random.split(key, 3)

    edge_types = (("user", "clicks", "item"), ("item", "rev_clicks", "user"))
    params = init_params(k_params, in_dim, hidden_dim, out_dim, num_heads,
                         edge_types)

    x_dict = {
        "user": jax.random.normal(k_user, (n_user, in_dim), jnp.float32),
        "item": jax.random.normal(k_item, (n_item, in_dim), jnp.float32),
    }

    # deterministic synthetic edge lists (src_idx, dst_idx); simple graph
    edges_ui = [(i, (3 * i + 1) % n_item) for i in range(n_user)] + \
               [(i, (3 * i + 2) % n_item) for i in range(n_user)]
    edges_iu = [(j, (7 * j + 3) % n_user) for j in range(n_item)] + \
               [(j, (7 * j + 10) % n_user) for j in range(n_item)]
    # dense masks only represent simple graphs (PyG softmax counts edge instances)
    assert len(set(edges_ui)) == len(edges_ui)
    assert len(set(edges_iu)) == len(edges_iu)

    edge_dict = {
        ("user", "clicks", "item"): edges_ui,
        ("item", "rev_clicks", "user"): edges_iu,
    }

    out = hetero_gat_forward(params, x_dict, edge_dict,
                             hidden_dim=hidden_dim, out_dim=out_dim,
                             num_heads=num_heads)
    jax.block_until_ready(out)

    assert out["user"].shape == (n_user, out_dim)
    assert out["item"].shape == (n_item, hidden_dim * num_heads)
    assert bool(jnp.all(jnp.isfinite(out["user"])))
    assert bool(jnp.all(jnp.isfinite(out["item"])))
    print("KERNEL_OK")
</pallas_src>

<mosaic_0001>
module attributes {stable_mosaic.version = 11 : i64} {
  func.func @_node_proj_kernel(%arg0: i32, %arg1: memref<128x16xf32, #tpu.memory_space<vmem>>, %arg2: memref<16x256xbf16, #tpu.memory_space<vmem>>, %arg3: memref<1x256xf32, #tpu.memory_space<vmem>>, %arg4: memref<128x256xf32, #tpu.memory_space<vmem>>) attributes {dimension_semantics = [#tpu.dimension_semantics<parallel>], iteration_bounds = array<i64: 2>, scalar_prefetch = 0 : i64, scratch_operands = 0 : i64, tpu.core_type = #tpu.core_type<tc>, window_params = [{transform_indices = @transform_0, window_bounds = array<i64: 128, 16>}, {pipeline_mode = #tpu.pipeline_mode<synchronous>, transform_indices = @transform_1, window_bounds = array<i64: 16, 256>}, {pipeline_mode = #tpu.pipeline_mode<synchronous>, transform_indices = @transform_2, window_bounds = array<i64: 1, 256>}, {transform_indices = @transform_3, window_bounds = array<i64: 128, 256>}]} {
    %c0 = arith.constant 0 : index
    %c0_0 = arith.constant 0 : index
    %0 = vector.load %arg1[%c0, %c0_0] : memref<128x16xf32, #tpu.memory_space<vmem>>, vector<128x16xf32>
    %1 = arith.truncf %0 : vector<128x16xf32> to vector<128x16xbf16>
    %c0_1 = arith.constant 0 : index
    %c0_2 = arith.constant 0 : index
    %2 = vector.load %arg2[%c0_1, %c0_2] : memref<16x256xbf16, #tpu.memory_space<vmem>>, vector<16x256xbf16>
    %cst = arith.constant dense<0.000000e+00> : vector<128x256xf32>
    %3 = tpu.matmul %1, %2, %cst {dimension_numbers = #tpu.dot_dimension_numbers<[1], [0], [0], [1], [0, 0, 1, 1], [], []>} : vector<128x16xbf16>, vector<16x256xbf16>, vector<128x256xf32> -> vector<128x256xf32>
    %c0_3 = arith.constant 0 : index
    %c0_4 = arith.constant 0 : index
    %4 = vector.load %arg3[%c0_3, %c0_4] : memref<1x256xf32, #tpu.memory_space<vmem>>, vector<1x256xf32>
    %5 = vector.broadcast %4 : vector<1x256xf32> to vector<128x256xf32>
    %6 = arith.addf %3, %5 : vector<128x256xf32>
    %c0_5 = arith.constant 0 : index
    %c0_6 = arith.constant 0 : index
    %7 = vector.load %arg4[%c0_5, %c0_6] : memref<128x256xf32, #tpu.memory_space<vmem>>, vector<128x256xf32>
    tpu.vector_store %arg4[%c0_5, %c0_6], %6 {strides = array<i32>} : memref<128x256xf32, #tpu.memory_space<vmem>>, vector<128x256xf32>,
    return
  }
  func.func @transform_0(%arg0: i32) -> (i32, i32) {
    %c0_i32 = arith.constant 0 : i32
    %c0_i32_0 = arith.constant 0 : i32
    return %arg0, %c0_i32 : i32, i32
  }
  func.func @transform_1(%arg0: i32) -> (i32, i32) {
    %c0_i32 = arith.constant 0 : i32
    %c0_i32_0 = arith.constant 0 : i32
    %c0_i32_1 = arith.constant 0 : i32
    return %c0_i32, %c0_i32_0 : i32, i32
  }
  func.func @transform_2(%arg0: i32) -> (i32, i32) {
    %c0_i32 = arith.constant 0 : i32
    %c0_i32_0 = arith.constant 0 : i32
    %c0_i32_1 = arith.constant 0 : i32
    return %c0_i32, %c0_i32_0 : i32, i32
  }
  func.func @transform_3(%arg0: i32) -> (i32, i32) {
    %c0_i32 = arith.constant 0 : i32
    %c0_i32_0 = arith.constant 0 : i32
    return %arg0, %c0_i32 : i32, i32
  }
}

</mosaic_0001>

<bundles_post_ra>
// kernel: tpu_custom_call.1
= control target key start
LH: loop header
LB: loop body
LE: loop exit
PB: predicated region body
PF: predicated region fallthrough
CT: control target
= control target key end

     0   :  { %8 = vsyncpa [#allocation3], 0  ;;  %s827_s0 = inlined_call_operand.vmem [shape: f32[256,16], index: 0, kind: input, shape index: {}]   ;;  %s828_s1 = inlined_call_operand.vmem [shape: bf16[16,256], index: 1, kind: input, shape index: {}]   ;;  %s829_s2 = inlined_call_operand.vmem [shape: f32[1,256], index: 2, kind: input, shape index: {}]   ;;  %s830_s3 = inlined_call_operand.hbm [shape: f32[256,256], index: 3, kind: output, shape index: {}]  }
   0x1   :  { %10 = vsyncpa [#allocation3 + $0x1], 0  ;;  %s619_s12 = smov 0   ;;  %s621_s13 = smov 0  }
   0x2   :  { %s623_s14 = smov 0   ;;  %s625_s15 = smov 0  }
   0x3 LB: > { %s640_s16 = sadd.s32 4294967295, %s595_s15   ;;  %s449_s17 = sadd.s32 4294967294, %s595_s15   ;;  %s595_s15 = sphi %s625_s15, %s836_s15   ;;  %s591_s14 = sphi %s623_s14, %s835_s14   ;;  %s587_s13 = sphi %s621_s13, %s834_s13   ;;  %s583_s12 = sphi %s619_s12, %s833_s12  }
   0x4   : > { %s644_s18 = sadd.s32 1, %s595_s15   ;;  %s91_s19 = sadd.s32 1, %s591_s14 }
   0x5   : > { %s88_s20 = ssub.s32 %s595_s15, %s644_s18  ;;  %p101_p0 = scmp.ne.s32.totalorder %s591_s14, %s587_s13 }
   0x6   : > { %p89_p1 = scmp.eq.s32.totalorder %s88_s20, 0  ;;  %p102_p2 = scmp.eq.s32.totalorder %s640_s16, 1 }
   0x7   : > { %p107_p3 = scmp.ne.s32.totalorder %s587_s13, %s583_s12  ;;  %p108_p4 = scmp.eq.s32.totalorder %s449_s17, 1 }
   0x8   : > { %s655_s21 = scalar_select %p89_p1, %s591_s14, %s91_s19  }
   0x9   : > { %p657_p5 = por %p102_p2, %p101_p0  ;;  %p661_p6 = por %p108_p4, %p107_p3 }
   0xa   : > { %p452_p7 = scmp.ge.s32.totalorder %s595_s15, 1  ;;  %p141_p8 = scmp.lt.s32.totalorder %s595_s15, 3 }
   0xc   : > { %p142_p9 = pnand %p452_p7, %p141_p8 }
   0xd   : > { %s454_s5 = sshll.u32 (!%p142_p9), %s640_s16, 4  ;;  %s162_s10 = sand.u32 (!%p142_p9), 1, %s587_s13  }
   0xe   : > { %145 = sbr.rel (%p142_p9) target bundleno = 222 (0xde), region = 32  ;;  %p166_p10 = scmp.lt.s32.totalorder (!%p142_p9), %s454_s5, 31 }
   0xf   : > { %s453_s19 = sshll.u32 (!%p142_p9), %s162_s10, 8  ;;  %s489_s24 = sshll.u32 (!%p142_p9), %s640_s16, 8 }
  0x10   : > { %s729_s20 = scalar_lea.vmem (!%p142_p9), [#allocation2], %s453_s19  ;;  %s383_s27 = scalar_lea.hbm (!%p142_p9), %s830_s3, %s489_s24 }
  0x11   : > { %s384_s16 = sshll.u32 (!%p142_p9), %s729_s20, 4  ;;  %s386_s28 = sshll.u32 (!%p142_p9), %s383_s27, 4  ;;  %s385_s16 = int_to_ptr.vmem [resolvable:$true] %s384_s16  ;;  %s387_s28 = int_to_ptr.hbm [resolvable:$true] %s386_s28 }
  0x12   : > { %s371_s29 = scalar_lea.sflag (!%p142_p9), [#allocation3], %s162_s10  ;;  %s547_s30 = sshra.s32 (!%p142_p9), %s387_s28, 4  ;;  %s548_s30 = int_to_ptr.hbm [resolvable:$true] %s547_s30 }
  0x13   : > { %v458_v0 = vld [vmem:[%s828_s1] sm:$0xf]  ;;  %v487_v1 = vld [vmem:[%s828_s1 + $0x4] sm:$0xf0]  ;;  %v486_v2 = vld [vmem:[%s828_s1 + $0x4] sm:$0xf]  ;;  %p554_p0 = scmp.lt.s32.totalorder %s548_s30, %s830_s3 }
  0x14   : > { %v459_v3 = vor.u32 %v487_v1, %v458_v0  ;;  %v460_v4 = vld [vmem:[%s828_s1 + $0x8] sm:$0xf0]  ;;  %s838_s5 = smov (!%p166_p10, %s454_s5), 31  ;;  %vm215_vm0 = vcmask 130048   ;;  %v199_v30 = vld [vmem:[%s829_s2] sm:$0x3] }
  0x15   : > { %v463_v5 = vor.u32 %v486_v2, %v460_v4  ;;  %s455_s6 = sshll.u32 %s838_s5, 3  ;;  %v723_v31 = vperm.slane %v199_v30, 0  ;;  %v725_v32 = vperm.slane %v199_v30, 1  ;;  %s549_s4 = scalar_lea.hbm %s548_s30, 256 }
  0x16   : > { %247 = vmatpush.bf16.msra.mxu0 %v459_v3  ;;  %490 = vmatpush.bf16.msra.mxu2 %v459_v3  ;;  %s683_s9 = scalar_lea.vmem %s827_s0, %s455_s6  ;;  %p550_p11 = scmp.ne.s32.totalorder %s548_s30, %s549_s4 }
  0x17   : > { %296 = vmatpush.bf16.msra.mxu1 %v463_v5  ;;  %491 = vmatpush.bf16.msra.mxu3 %v463_v5  ;;  %v173_v6 = vld [vmem:[%s683_s9] sm:$0xff]  ;;  %v174_v7 = vld [vmem:[%s683_s9 + $0x8] sm:$0xff]  ;;  %v175_v12 = vld [vmem:[%s683_s9 + $0x10] sm:$0xff]  ;;  %s553_s7 = scalar_lea.hbm %s830_s3, 512 }
  0x18   : > { %v181_v8 = vld [vmem:[%s683_s9 + $0x40] sm:$0xff]  ;;  %v189_v9 = vpack.c.bf16 %v174_v7, %v173_v6  ;;  %v182_v10 = vld [vmem:[%s683_s9 + $0x48] sm:$0xff]  ;;  %v176_v13 = vld [vmem:[%s683_s9 + $0x18] sm:$0xff]  ;;  %p551_p12 = pnand %p550_p11, %p657_p5  ;;  %p555_p1 = scmp.lt.s32.totalorder %s553_s7, %s549_s4 }
  0x19   : > { %v193_v11 = vpack.c.bf16 %v182_v10, %v181_v8  ;;  %v183_v14 = vld [vmem:[%s683_s9 + $0x50] sm:$0xff]  ;;  %v184_v15 = vld [vmem:[%s683_s9 + $0x58] sm:$0xff]  ;;  %v190_v16 = vpack.c.bf16 %v176_v13, %v175_v12  ;;  %v177_v18 = vld [vmem:[%s683_s9 + $0x20] sm:$0xff] }
  0x1a   : > { %464 = vmatmul.msk.bf16.vlgmr.msra.gmra.mxu0 %vm215_vm0, %v189_v9  ;;  %472 = vmatmul.msk.bf16.vlgmr.msra.gmra.mxu1 %vm215_vm0, %v189_v9  ;;  %v194_v17 = vpack.c.bf16 %v184_v15, %v183_v14  ;;  %v178_v19 = vld [vmem:[%s683_s9 + $0x28] sm:$0xff]  ;;  %v185_v20 = vld [vmem:[%s683_s9 + $0x60] sm:$0xff]  ;;  %v179_v24 = vld [vmem:[%s683_s9 + $0x30] sm:$0xff]  ;;  %p552_p13 = pneg %p551_p12  ;;  %p556_p2 = por %p555_p1, %p554_p0 }
  0x1b   : > { %468 = vmatmul.msk.bf16.vlgmr.msra.gmra.mxu2 %vm215_vm0, %v193_v11  ;;  %476 = vmatmul.msk.bf16.vlgmr.msra.gmra.mxu3 %vm215_vm0, %v193_v11  ;;  %v186_v21 = vld [vmem:[%s683_s9 + $0x68] sm:$0xff]  ;;  %v191_v22 = vpack.c.bf16 %v178_v19, %v177_v18  ;;  %v180_v25 = vld [vmem:[%s683_s9 + $0x38] sm:$0xff]  ;;  %v187_v26 = vld [vmem:[%s683_s9 + $0x70] sm:$0xff] }
  0x1c   : > { %v195_v23 = vpack.c.bf16 %v186_v21, %v185_v20  ;;  %v188_v27 = vld [vmem:[%s683_s9 + $0x78] sm:$0xff]  ;;  %v192_v28 = vpack.c.bf16 %v180_v25, %v179_v24  ;;  %p557_p3 = pnand %p556_p2, %p552_p13 }
  0x1d   : > { %v196_v29 = vpack.c.bf16 %v188_v27, %v187_v26 }
  0x2a   : > { %465 = vmatmul.msk.bf16.gmra.mxu0 %vm215_vm0, %v190_v16  ;;  %473 = vmatmul.msk.bf16.gmra.mxu1 %vm215_vm0, %v190_v16 }
  0x2b   : > { %469 = vmatmul.msk.bf16.gmra.mxu2 %vm215_vm0, %v194_v17  ;;  %477 = vmatmul.msk.bf16.gmra.mxu3 %vm215_vm0, %v194_v17 }
  0x3a   : > { %466 = vmatmul.msk.bf16.gmra.mxu0 %vm215_vm0, %v191_v22  ;;  %474 = vmatmul.msk.bf16.gmra.mxu1 %vm215_vm0, %v191_v22 }
  0x3b   : > { %470 = vmatmul.msk.bf16.gmra.mxu2 %vm215_vm0, %v195_v23  ;;  %478 = vmatmul.msk.bf16.gmra.mxu3 %vm215_vm0, %v195_v23 }
  0x4a   : > { %467 = vmatmul.msk.bf16.gmra.mxu0 %vm215_vm0, %v192_v28  ;;  %475 = vmatmul.msk.bf16.gmra.mxu1 %vm215_vm0, %v192_v28 }
  0x4b   : > { %471 = vmatmul.msk.bf16.gmra.mxu2 %vm215_vm0, %v196_v29  ;;  %479 = vmatmul.msk.bf16.gmra.mxu3 %vm215_vm0, %v196_v29 }
  0x97   : > { %v249_v33 = vpop.f32.mrf.mxu0  ;;  %v298_v34 = vpop.f32.mrf.mxu1 }
  0x98   : > { %v250_v35 = vadd.f32 %v249_v33, %v723_v31  ;;  %v299_v36 = vadd.f32 %v298_v34, %v725_v32 }
  0x9a   : > { %338 = vst [vmem:[%s729_s20] sm:$0xff] %v250_v35 }
  0x9b   : > { %339 = vst [vmem:[%s729_s20 + $0x8] sm:$0xff] %v299_v36 }
  0x9e   : > { %v269_v37 = vpop.f32.mrf.mxu2  ;;  %v318_v38 = vpop.f32.mrf.mxu3 }
  0x9f   : > { %v270_v39 = vadd.f32 %v269_v37, %v723_v31  ;;  %v319_v40 = vadd.f32 %v318_v38, %v725_v32  ;;  %v251_v41 = vpop.f32.mrf.mxu0  ;;  %v300_v42 = vpop.f32.mrf.mxu1 }
  0xa0   : > { %v252_v43 = vadd.f32 %v251_v41, %v723_v31  ;;  %v301_v44 = vadd.f32 %v300_v42, %v725_v32 }
  0xa1   : > { %354 = vst [vmem:[%s729_s20 + $0x80] sm:$0xff] %v270_v39 }
  0xa2   : > { %355 = vst [vmem:[%s729_s20 + $0x88] sm:$0xff] %v319_v40 }
  0xa3   : > { %340 = vst [vmem:[%s729_s20 + $0x10] sm:$0xff] %v252_v43 }
  0xa4   : > { %341 = vst [vmem:[%s729_s20 + $0x18] sm:$0xff] %v301_v44 }
  0xa6   : > { %v271_v45 = vpop.f32.mrf.mxu2  ;;  %v320_v46 = vpop.f32.mrf.mxu3 }
  0xa7   : > { %v272_v47 = vadd.f32 %v271_v45, %v723_v31  ;;  %v321_v48 = vadd.f32 %v320_v46, %v725_v32  ;;  %v254_v49 = vpop.f32.mrf.mxu0  ;;  %v303_v50 = vpop.f32.mrf.mxu1 }
  0xa8   : > { %v255_v51 = vadd.f32 %v254_v49, %v723_v31  ;;  %v304_v52 = vadd.f32 %v303_v50, %v725_v32 }
  0xa9   : > { %356 = vst [vmem:[%s729_s20 + $0x90] sm:$0xff] %v272_v47 }
  0xaa   : > { %357 = vst [vmem:[%s729_s20 + $0x98] sm:$0xff] %v321_v48 }
  0xab   : > { %342 = vst [vmem:[%s729_s20 + $0x20] sm:$0xff] %v255_v51 }
  0xac   : > { %343 = vst [vmem:[%s729_s20 + $0x28] sm:$0xff] %v304_v52 }
  0xae   : > { %v274_v53 = vpop.f32.mrf.mxu2  ;;  %v323_v54 = vpop.f32.mrf.mxu3 }
  0xaf   : > { %v275_v55 = vadd.f32 %v274_v53, %v723_v31  ;;  %v324_v56 = vadd.f32 %v323_v54, %v725_v32  ;;  %v256_v57 = vpop.f32.mrf.mxu0  ;;  %v305_v58 = vpop.f32.mrf.mxu1 }
  0xb0   : > { %v257_v59 = vadd.f32 %v256_v57, %v723_v31  ;;  %v306_v60 = vadd.f32 %v305_v58, %v725_v32 }
  0xb1   : > { %358 = vst [vmem:[%s729_s20 + $0xa0] sm:$0xff] %v275_v55 }
  0xb2   : > { %359 = vst [vmem:[%s729_s20 + $0xa8] sm:$0xff] %v324_v56 }
  0xb3   : > { %344 = vst [vmem:[%s729_s20 + $0x30] sm:$0xff] %v257_v59 }
  0xb4   : > { %345 = vst [vmem:[%s729_s20 + $0x38] sm:$0xff] %v306_v60 }
  0xb6   : > { %v276_v61 = vpop.f32.mrf.mxu2  ;;  %v325_v62 = vpop.f32.mrf.mxu3 }
  0xb7   : > { %v277_v63 = vadd.f32 %v276_v61, %v723_v31  ;;  %v326_v0 = vadd.f32 %v325_v62, %v725_v32  ;;  %v259_v1 = vpop.f32.mrf.mxu0  ;;  %v308_v2 = vpop.f32.mrf.mxu1 }
  0xb8   : > { %v260_v3 = vadd.f32 %v259_v1, %v723_v31  ;;  %v309_v4 = vadd.f32 %v308_v2, %v725_v32 }
  0xb9   : > { %360 = vst [vmem:[%s729_s20 + $0xb0] sm:$0xff] %v277_v63 }
  0xba   : > { %361 = vst [vmem:[%s729_s20 + $0xb8] sm:$0xff] %v326_v0 }
  0xbb   : > { %346 = vst [vmem:[%s729_s20 + $0x40] sm:$0xff] %v260_v3 }
  0xbc   : > { %347 = vst [vmem:[%s729_s20 + $0x48] sm:$0xff] %v309_v4 }
  0xbe   : > { %v279_v5 = vpop.f32.mrf.mxu2  ;;  %v328_v6 = vpop.f32.mrf.mxu3 }
  0xbf   : > { %v280_v7 = vadd.f32 %v279_v5, %v723_v31  ;;  %v329_v8 = vadd.f32 %v328_v6, %v725_v32  ;;  %v261_v9 = vpop.f32.mrf.mxu0  ;;  %v310_v10 = vpop.f32.mrf.mxu1 }
  0xc0   : > { %v262_v11 = vadd.f32 %v261_v9, %v723_v31  ;;  %v311_v12 = vadd.f32 %v310_v10, %v725_v32 }
  0xc1   : > { %362 = vst [vmem:[%s729_s20 + $0xc0] sm:$0xff] %v280_v7 }
  0xc2   : > { %363 = vst [vmem:[%s729_s20 + $0xc8] sm:$0xff] %v329_v8 }
  0xc3   : > { %348 = vst [vmem:[%s729_s20 + $0x50] sm:$0xff] %v262_v11 }
  0xc4   : > { %349 = vst [vmem:[%s729_s20 + $0x58] sm:$0xff] %v311_v12 }
  0xc6   : > { %v281_v13 = vpop.f32.mrf.mxu2  ;;  %v330_v14 = vpop.f32.mrf.mxu3 }
  0xc7   : > { %v282_v15 = vadd.f32 %v281_v13, %v723_v31  ;;  %v331_v16 = vadd.f32 %v330_v14, %v725_v32  ;;  %v264_v17 = vpop.f32.mrf.mxu0  ;;  %v313_v18 = vpop.f32.mrf.mxu1 }
  0xc8   : > { %v265_v19 = vadd.f32 %v264_v17, %v723_v31  ;;  %v314_v20 = vadd.f32 %v313_v18, %v725_v32 }
  0xc9   : > { %364 = vst [vmem:[%s729_s20 + $0xd0] sm:$0xff] %v282_v15 }
  0xca   : > { %365 = vst [vmem:[%s729_s20 + $0xd8] sm:$0xff] %v331_v16 }
  0xcb   : > { %350 = vst [vmem:[%s729_s20 + $0x60] sm:$0xff] %v265_v19 }
  0xcc   : > { %351 = vst [vmem:[%s729_s20 + $0x68] sm:$0xff] %v314_v20 }
  0xce   : > { %v284_v21 = vpop.f32.mrf.mxu2  ;;  %v333_v22 = vpop.f32.mrf.mxu3 }
  0xcf   : > { %v285_v23 = vadd.f32 %v284_v21, %v723_v31  ;;  %v334_v24 = vadd.f32 %v333_v22, %v725_v32  ;;  %v266_v25 = vpop.f32.mrf.mxu0  ;;  %v315_v26 = vpop.f32.mrf.mxu1 }
  0xd0   : > { %v267_v27 = vadd.f32 %v266_v25, %v723_v31  ;;  %v316_v28 = vadd.f32 %v315_v26, %v725_v32 }
  0xd1   : > { %366 = vst [vmem:[%s729_s20 + $0xe0] sm:$0xff] %v285_v23 }
  0xd2   : > { %367 = vst [vmem:[%s729_s20 + $0xe8] sm:$0xff] %v334_v24 }
  0xd3   : > { %352 = vst [vmem:[%s729_s20 + $0x70] sm:$0xff] %v267_v27 }
  0xd4   : > { %353 = vst [vmem:[%s729_s20 + $0x78] sm:$0xff] %v316_v28 }
  0xd6   : > { %v286_v29 = vpop.f32.mrf.mxu2  ;;  %v335_v30 = vpop.f32.mrf.mxu3 }
  0xd7   : > { %v287_v33 = vadd.f32 %v286_v29, %v723_v31  ;;  %v336_v34 = vadd.f32 %v335_v30, %v725_v32 }
  0xd9   : > { %368 = vst [vmem:[%s729_s20 + $0xf0] sm:$0xff] %v287_v33 }
  0xda   : > { %369 = vst [vmem:[%s729_s20 + $0xf8] sm:$0xff] %v336_v34 }
  0xdb   : > { %560 = shalt.err (!%p557_p3)
}
  0xdc   : > { %s597_s10 = smov 256   ;;  %s598_s11 = smov 16  }
  0xdd   : > { %492 = dma.vmem_to_hbm [thread:$0]  (%p657_p5), %s385_s16, 4096, %s387_s28, %s371_s29, %s597_s10, %s597_s10, %s598_s11  }
  0xde PF: > { %p498_p4 = scmp.ge.s32.totalorder %s595_s15, 2  ;;  %s401_s17 = sand.u32 1, %s583_s12  }
  0xdf   : > { %s402_s19 = scalar_lea.sflag [#allocation3], %s401_s17 }
  0xe0   : > { %p495_p7 = pnand %p498_p4, %p661_p6 }
  0xe2   : > { %p496_p8 = pneg %p495_p7 }
  0xe4   : > { %578 = dma.done.wait (%p496_p8), %s402_s19, 4096  }
  0xe5   : > { %580 = vsyncadd (%p496_p8), %s402_s19, 4294963200  ;;  %p13_p9 = scmp.ge.s32.totalorder %s644_s18, 4   ;;  %s833_s12 = smov %s587_s13 }
  0xe6   : > { %s834_s13 = smov %s591_s14  ;;  %s835_s14 = smov %s655_s21 }
  0xe7   : > { %s836_s15 = smov %s644_s18  ;;  %15 = sbr.rel (!%p13_p9) target bundleno = 3 (0x3), region = 67 }
  0xec   :  { %408 = vsyncpa [#allocation3], 1 }
  0xed   :  { %410 = vsyncpa [#allocation3 + $0x1], 1 }

</bundles_post_ra>
